<compile_context>
chip_gen: v6e
topology: v6e:2x2x1
jax: 0.10.0
libtpu: 0.0.40
codegen_flags: <defaults>
</compile_context>

<pallas_src>
import functools

import jax
import jax.numpy as jnp
from jax.experimental import pallas as pl
from jax.experimental.pallas import tpu as pltpu

BN_EPS = 1e-5
LANE = 128


def _round_up(v, m):
    return ((v + m - 1) // m) * m


# --------------------------------------------------------------------------
# Fused Pallas kernel: all heads, all layers; one grid step per batch element
# --------------------------------------------------------------------------
def _fused_heads_kernel(*refs, K, n_mid):
    """refs = x, w0, b0, [wmid, bmid,] wf, bf, out."""
    if n_mid > 0:
        x_ref, w0_ref, b0_ref, wmid_ref, bmid_ref, wf_ref, bf_ref, o_ref = refs
    else:
        x_ref, w0_ref, b0_ref, wf_ref, bf_ref, o_ref = refs
        wmid_ref = bmid_ref = None

    pad = K // 2
    L = x_ref.shape[1]
    cdt = w0_ref.dtype                    # MXU compute dtype (f32 or bf16)

    def window(h):
        """[L, C] f32 -> lane-concatenated K-tap window [L, K*C] (f32).

        Shifted taps come from in-register sublane slices of a zero-padded copy,
        so no scratch memset, no boundary masking (tile == one batch element) and
        no misaligned VMEM stores; the K taps feed ONE deep matmul per layer.
        """
        if pad == 0:
            return h
        C = h.shape[1]
        z = jnp.zeros((pad, C), jnp.float32)
        hp = jnp.concatenate([z, h, z], axis=0)            # [L + 2*pad, C]
        return jnp.concatenate([hp[k:k + L, :] for k in range(K)], axis=-1)

    # Layer 0: all heads stacked along output lanes; one matmul of depth K*CinP.
    x = x_ref[0].astype(jnp.float32)                       # [L, CinP]
    h = jnp.dot(window(x).astype(cdt), w0_ref[...],
                preferred_element_type=jnp.float32)
    h = jnp.maximum(h + b0_ref[...], 0.0)                  # f32 BN-shift + ReLU

    # Deeper hidden layers: block-diagonal stacked weights across heads
    # (identity centre-tap blocks for heads that already finished their convs).
    for j in range(n_mid):
        h = jnp.dot(window(h).astype(cdt), wmid_ref[j],
                    preferred_element_type=jnp.float32)
        h = jnp.maximum(h + bmid_ref[j], 0.0)

    # Final conv of every head; outputs concatenated into one lane-dense slab.
    out = jnp.dot(window(h).astype(cdt), wf_ref[...],
                  preferred_element_type=jnp.float32) + bf_ref[...]
    o_ref[0] = out.astype(o_ref.dtype)


def separate_head_forward(packed, x_ncl, *, kernel_size, head_info,
                          compute_dtype=jnp.float32):
    """x_ncl: [B, C_in, L] (PyTorch NCL) -> dict name -> [B, out_channels, L]."""
    B, Cin, L = x_ncl.shape
    K = kernel_size
    CinP = packed['w0'].shape[0] // K
    HCP = packed['w0'].shape[1]
    CoutP = packed['wf'].shape[1]
    n_mid = packed['wmid'].shape[0] if 'wmid' in packed else 0
    cout_sum = sum(co for _, co in head_info)
    itm = jnp.dtype(compute_dtype).itemsize

    # NCL -> channels-last; zero-pad input channels up to a lane multiple.
    x = jnp.transpose(x_ncl, (0, 2, 1))                    # [B, L, Cin]
    if CinP > Cin:
        x = jnp.pad(x, ((0, 0), (0, 0), (0, CinP - Cin)))
    x = x.astype(compute_dtype)

    w0 = packed['w0'].astype(compute_dtype)
    wf = packed['wf'].astype(compute_dtype)
    b0, bf = packed['b0'], packed['bf']                    # shifts / biases stay f32

    inputs = [x, w0, b0]
    in_specs = [
        pl.BlockSpec((1, L, CinP), lambda b: (b, 0, 0)),   # per-batch row tile
        pl.BlockSpec((K * CinP, HCP), lambda b: (0, 0)),   # weights: VMEM-resident
        pl.BlockSpec((1, HCP), lambda b: (0, 0)),
    ]
    if n_mid > 0:
        inputs += [packed['wmid'].astype(compute_dtype), packed['bmid']]
        in_specs += [
            pl.BlockSpec((n_mid, K * HCP, HCP), lambda b: (0, 0, 0)),
            pl.BlockSpec((n_mid, 1, HCP), lambda b: (0, 0, 0)),
        ]
    inputs += [wf, bf]
    in_specs += [
        pl.BlockSpec((K * HCP, CoutP), lambda b: (0, 0)),
        pl.BlockSpec((1, CoutP), lambda b: (0, 0)),
    ]

    # VMEM budget and cost hints derived from the chosen tile / weight sizes.
    weight_bytes = ((K * CinP * HCP + n_mid * K * HCP * HCP + K * HCP * CoutP) * itm
                    + ((1 + n_mid) * HCP + CoutP) * 4)
    tile_bytes = 2 * L * CinP * itm + 2 * L * CoutP * 4    # double-buffered in/out
    work_bytes = 8 * L * K * max(CinP, HCP) * 4            # window / activation slack
    vmem_limit = int(min(max(2 * (weight_bytes + tile_bytes + work_bytes),
                             16 * 2**20), 48 * 2**20))
    flops = 2 * B * L * K * (CinP * HCP + n_mid * HCP * HCP + HCP * CoutP)
    bytes_accessed = B * L * CinP * itm + weight_bytes + B * L * CoutP * 4

    kern = functools.partial(_fused_heads_kernel, K=K, n_mid=n_mid)
    y = pl.pallas_call(
        kern,
        out_shape=jax.ShapeDtypeStruct((B, L, CoutP), x_ncl.dtype),
        grid_spec=pltpu.PrefetchScalarGridSpec(
            num_scalar_prefetch=0,
            grid=(B,),                                     # row tile = one batch element
            in_specs=in_specs,
            out_specs=pl.BlockSpec((1, L, CoutP), lambda b: (b, 0, 0)),
        ),
        compiler_params=pltpu.CompilerParams(
            dimension_semantics=("parallel",),             # megacore-shardable on v7x
            vmem_limit_bytes=vmem_limit),
        cost_estimate=pl.CostEstimate(flops=int(flops), transcendentals=0,
                                      bytes_accessed=int(bytes_accessed)),
    )(*inputs)

    # Drop lane padding, split per head and go back to NCL (cold path).
    y = y[:, :, :cout_sum]
    out, off = {}, 0
    for name, co in head_info:
        out[name] = jnp.transpose(y[:, :, off:off + co], (0, 2, 1))
        off += co
    return out


# --------------------------------------------------------------------------
# Parameter initialization (deterministic, mirrors the nn.Module __init__)
# --------------------------------------------------------------------------
def init_separate_head(key, input_channels, head_channels, kernel_size,
                       sep_head_dict, init_bias=-2.19):
    params = {}
    for name, cfg in sep_head_dict.items():
        cout, num_conv = cfg['out_channels'], cfg['num_conv']
        layers = []
        for _ in range(num_conv - 1):               # Conv1d(no bias) + BN + ReLU
            key, kw = jax.random.split(key)
            w = 0.05 * jax.random.normal(
                kw, (kernel_size, input_channels, head_channels), jnp.float32)
            gamma = jnp.ones((head_channels,), jnp.float32)
            beta = jnp.zeros((head_channels,), jnp.float32)
            mean = jnp.zeros((head_channels,), jnp.float32)
            var = jnp.ones((head_channels,), jnp.float32)
            scale = gamma / jnp.sqrt(var + BN_EPS)
            shift = beta - mean * scale
            layers.append(dict(w=w, scale=scale[None, :], shift=shift[None, :],
                               relu=True))
        key, kw, kb = jax.random.split(key, 3)      # final Conv1d with bias
        w = 0.05 * jax.random.normal(
            kw, (kernel_size, head_channels, cout), jnp.float32)
        if 'hm' in name:
            bias = jnp.full((cout,), init_bias, jnp.float32)
        else:
            bias = 0.01 * jax.random.normal(kb, (cout,), jnp.float32)
        layers.append(dict(w=w, scale=jnp.ones((1, cout), jnp.float32),
                           shift=bias[None, :], relu=False))
        params[name] = layers
    return params


def pack_fused_params(params, sep_head_dict, input_channels, head_channels,
                      kernel_size):
    """Stack all heads/layers into the fused-kernel layout (BN folded, lane-padded)."""
    names = list(sep_head_dict.keys())
    Ch = head_channels
    HC = len(names) * Ch
    K = kernel_size
    pad = K // 2
    convs = [sep_head_dict[n]['num_conv'] for n in names]
    couts = [sep_head_dict[n]['out_channels'] for n in names]
    assert all(c >= 2 for c in convs), "fused path needs num_conv >= 2 per head"
    n_mid = max(convs) - 2
    if n_mid > 0:
        # Same implicit constraint as the PyTorch module (hidden convs take input_channels).
        assert input_channels == head_channels
    cout_sum = sum(couts)

    CinP = _round_up(input_channels, LANE)
    HCP = _round_up(HC, LANE)
    CoutP = _round_up(cout_sum, LANE)

    def folded(lyr):                                # fold BN scale (or ones) into w
        return lyr['w'] * lyr['scale'][0]

    # Layer 0: heads stacked along output lanes; taps stacked along contraction rows.
    w0 = jnp.zeros((K, CinP, HCP), jnp.float32)
    b0 = jnp.zeros((1, HCP), jnp.float32)
    for h, n in enumerate(names):
        sl = slice(h * Ch, (h + 1) * Ch)
        w0 = w0.at[:, :input_channels, sl].set(folded(params[n][0]))
        b0 = b0.at[:, sl].set(params[n][0]['shift'])
    packed = dict(w0=w0.reshape(K * CinP, HCP), b0=b0)

    # Deeper hidden layers: block-diagonal across heads; identity pass-through for
    # heads with fewer convs (valid because hidden activations are >= 0 post-ReLU
    # and their bias block stays zero).
    if n_mid > 0:
        wmid = jnp.zeros((n_mid, K, HCP, HCP), jnp.float32)
        bmid = jnp.zeros((n_mid, 1, HCP), jnp.float32)
        eye = jnp.eye(Ch, dtype=jnp.float32)
        for j in range(n_mid):
            for h, n in enumerate(names):
                sl = slice(h * Ch, (h + 1) * Ch)
                n_hidden = sep_head_dict[n]['num_conv'] - 1
                if j + 1 < n_hidden:
                    lyr = params[n][j + 1]
                    wmid = wmid.at[j, :, sl, sl].set(folded(lyr))
                    bmid = bmid.at[j, :, sl].set(lyr['shift'])
                else:
                    wmid = wmid.at[j, pad, sl, sl].set(eye)
        packed['wmid'] = wmid.reshape(n_mid, K * HCP, HCP)
        packed['bmid'] = bmid

    # Final convs: outputs of all heads concatenated into one lane-padded slab.
    wf = jnp.zeros((K, HCP, CoutP), jnp.float32)
    bf = jnp.zeros((1, CoutP), jnp.float32)
    off = 0
    for h, n in enumerate(names):
        co = couts[h]
        lyr = params[n][-1]
        wf = wf.at[:, h * Ch:(h + 1) * Ch, off:off + co].set(folded(lyr))
        bf = bf.at[:, off:off + co].set(lyr['shift'])
        off += co
    packed['wf'] = wf.reshape(K * HCP, CoutP)
    packed['bf'] = bf

    return packed, tuple(zip(names, couts))


# --------------------------------------------------------------------------
# Pure-JAX reference (lax.conv) for correctness checking
# --------------------------------------------------------------------------
def _ref_forward(params, x_ncl):
    out = {}
    for name, layers in params.items():
        h = x_ncl
        for lyr in layers:
            K = lyr['w'].shape[0]
            w_oik = jnp.transpose(lyr['w'], (2, 1, 0))   # [Cout, Cin, K]
            y = jax.lax.conv_general_dilated(
                h, w_oik, (1,), [(K // 2, K // 2)],
                dimension_numbers=('NCH', 'OIH', 'NCH'))
            y = y * lyr['scale'][0][None, :, None] + lyr['shift'][0][None, :, None]
            if lyr['relu']:
                y = jnp.maximum(y, 0.0)
            h = y
        out[name] = h
    return out


if __name__ == "__main__":
    # Small shapes consistent with the module: Conv1d heads over a query sequence.
    B, C_IN, C_HEAD, K, L = 2, 32, 32, 3, 16
    sep_head_dict = {
        'hm':     {'out_channels': 2, 'num_conv': 2},   # 'hm' -> bias filled with -2.19
        'center': {'out_channels': 2, 'num_conv': 2},
        'dim':    {'out_channels': 3, 'num_conv': 3},   # exercises stacked deep-layer path
    }

    root = jax.random.PRNGKey(0)
    k_param, k_x = jax.random.split(root)
    params = init_separate_head(k_param, C_IN, C_HEAD, K, sep_head_dict)
    x = jax.random.normal(k_x, (B, C_IN, L), jnp.float32)   # PyTorch NCL input

    packed, head_info = pack_fused_params(params, sep_head_dict, C_IN, C_HEAD, K)
    ref = _ref_forward(params, x)

    # f32 compute path (tight check).
    fwd_f32 = jax.jit(functools.partial(
        separate_head_forward, kernel_size=K, head_info=head_info,
        compute_dtype=jnp.float32))
    out = fwd_f32(packed, x)
    out = jax.tree_util.tree_map(jax.block_until_ready, out)
    for name, co in head_info:
        assert out[name].shape == (B, co, L), name
        assert jnp.allclose(out[name], ref[name], rtol=1e-3, atol=1e-3), name

    # bf16 MXU path (bf16 x/weights, f32 accumulation + f32 epilogue); looser tolerance.
    fwd_bf16 = jax.jit(functools.partial(
        separate_head_forward, kernel_size=K, head_info=head_info,
        compute_dtype=jnp.bfloat16))
    out_bf = fwd_bf16(packed, x)
    out_bf = jax.tree_util.tree_map(jax.block_until_ready, out_bf)
    for name, _ in head_info:
        assert jnp.allclose(out_bf[name], ref[name], rtol=5e-2, atol=5e-2), name

    print("KERNEL_OK")
</pallas_src>

<mosaic_0001>
module attributes {stable_mosaic.version = 11 : i64} {
  func.func @_fused_heads_kernel(%arg0: i32, %arg1: memref<1x16x128xf32, #tpu.memory_space<vmem>>, %arg2: memref<384x128xf32, #tpu.memory_space<vmem>>, %arg3: memref<1x128xf32, #tpu.memory_space<vmem>>, %arg4: memref<1x384x128xf32, #tpu.memory_space<vmem>>, %arg5: memref<1x1x128xf32, #tpu.memory_space<vmem>>, %arg6: memref<384x128xf32, #tpu.memory_space<vmem>>, %arg7: memref<1x128xf32, #tpu.memory_space<vmem>>, %arg8: memref<1x16x128xf32, #tpu.memory_space<vmem>>) attributes {dimension_semantics = [#tpu.dimension_semantics<parallel>], iteration_bounds = array<i64: 2>, scalar_prefetch = 0 : i64, scratch_operands = 0 : i64, tpu.core_type = #tpu.core_type<tc>, window_params = [{transform_indices = @transform_0, window_bounds = array<i64: 1, 16, 128>}, {pipeline_mode = #tpu.pipeline_mode<synchronous>, transform_indices = @transform_1, window_bounds = array<i64: 384, 128>}, {pipeline_mode = #tpu.pipeline_mode<synchronous>, transform_indices = @transform_2, window_bounds = array<i64: 1, 128>}, {pipeline_mode = #tpu.pipeline_mode<synchronous>, transform_indices = @transform_3, window_bounds = array<i64: 1, 384, 128>}, {pipeline_mode = #tpu.pipeline_mode<synchronous>, transform_indices = @transform_4, window_bounds = array<i64: 1, 1, 128>}, {pipeline_mode = #tpu.pipeline_mode<synchronous>, transform_indices = @transform_5, window_bounds = array<i64: 384, 128>}, {pipeline_mode = #tpu.pipeline_mode<synchronous>, transform_indices = @transform_6, window_bounds = array<i64: 1, 128>}, {transform_indices = @transform_7, window_bounds = array<i64: 1, 16, 128>}]} {
    %c0 = arith.constant 0 : index
    %c0_0 = arith.constant 0 : index
    %c0_1 = arith.constant 0 : index
    %0 = vector.load %arg1[%c0, %c0_0, %c0_1] : memref<1x16x128xf32, #tpu.memory_space<vmem>>, vector<1x16x128xf32>
    %1 = vector.shape_cast %0 : vector<1x16x128xf32> to vector<16x128xf32>
    %cst = arith.constant 0.000000e+00 : f32
    %2 = vector.broadcast %cst : f32 to vector<1x128xf32>
    %3 = tpu.concatenate %2, %1, %2 in 0 : vector<1x128xf32>, vector<16x128xf32>, vector<1x128xf32> -> vector<18x128xf32>
    %4 = vector.extract_strided_slice %3 {offsets = [0, 0], sizes = [16, 128], strides = [1, 1]} : vector<18x128xf32> to vector<16x128xf32>
    %5 = vector.extract_strided_slice %3 {offsets = [1, 0], sizes = [16, 128], strides = [1, 1]} : vector<18x128xf32> to vector<16x128xf32>
    %6 = vector.extract_strided_slice %3 {offsets = [2, 0], sizes = [16, 128], strides = [1, 1]} : vector<18x128xf32> to vector<16x128xf32>
    %7 = tpu.concatenate %4, %5, %6 in 1 : vector<16x128xf32>, vector<16x128xf32>, vector<16x128xf32> -> vector<16x384xf32>
    %c0_2 = arith.constant 0 : index
    %c0_3 = arith.constant 0 : index
    %8 = vector.load %arg2[%c0_2, %c0_3] : memref<384x128xf32, #tpu.memory_space<vmem>>, vector<384x128xf32>
    %cst_4 = arith.constant dense<0.000000e+00> : vector<16x128xf32>
    %9 = tpu.matmul %7, %8, %cst_4 {dimension_numbers = #tpu.dot_dimension_numbers<[1], [0], [0], [1], [0, 0, 1, 1], [], []>} : vector<16x384xf32>, vector<384x128xf32>, vector<16x128xf32> -> vector<16x128xf32>
    %c0_5 = arith.constant 0 : index
    %c0_6 = arith.constant 0 : index
    %10 = vector.load %arg3[%c0_5, %c0_6] : memref<1x128xf32, #tpu.memory_space<vmem>>, vector<1x128xf32>
    %11 = vector.broadcast %10 : vector<1x128xf32> to vector<16x128xf32>
    %12 = arith.addf %9, %11 : vector<16x128xf32>
    %cst_7 = arith.constant 0.000000e+00 : f32
    %13 = vector.broadcast %cst_7 : f32 to vector<16x128xf32>
    %14 = arith.maximumf %12, %13 : vector<16x128xf32>
    %cst_8 = arith.constant 0.000000e+00 : f32
    %15 = vector.broadcast %cst_8 : f32 to vector<1x128xf32>
    %16 = tpu.concatenate %15, %14, %15 in 0 : vector<1x128xf32>, vector<16x128xf32>, vector<1x128xf32> -> vector<18x128xf32>
    %17 = vector.extract_strided_slice %16 {offsets = [0, 0], sizes = [16, 128], strides = [1, 1]} : vector<18x128xf32> to vector<16x128xf32>
    %18 = vector.extract_strided_slice %16 {offsets = [1, 0], sizes = [16, 128], strides = [1, 1]} : vector<18x128xf32> to vector<16x128xf32>
    %19 = vector.extract_strided_slice %16 {offsets = [2, 0], sizes = [16, 128], strides = [1, 1]} : vector<18x128xf32> to vector<16x128xf32>
    %20 = tpu.concatenate %17, %18, %19 in 1 : vector<16x128xf32>, vector<16x128xf32>, vector<16x128xf32> -> vector<16x384xf32>
    %c0_9 = arith.constant 0 : index
    %c0_10 = arith.constant 0 : index
    %c0_11 = arith.constant 0 : index
    %21 = vector.load %arg4[%c0_9, %c0_10, %c0_11] : memref<1x384x128xf32, #tpu.memory_space<vmem>>, vector<1x384x128xf32>
    %22 = vector.shape_cast %21 : vector<1x384x128xf32> to vector<384x128xf32>
    %cst_12 = arith.constant dense<0.000000e+00> : vector<16x128xf32>
    %23 = tpu.matmul %20, %22, %cst_12 {dimension_numbers = #tpu.dot_dimension_numbers<[1], [0], [0], [1], [0, 0, 1, 1], [], []>} : vector<16x384xf32>, vector<384x128xf32>, vector<16x128xf32> -> vector<16x128xf32>
    %c0_13 = arith.constant 0 : index
    %c0_14 = arith.constant 0 : index
    %c0_15 = arith.constant 0 : index
    %24 = vector.load %arg5[%c0_13, %c0_14, %c0_15] : memref<1x1x128xf32, #tpu.memory_space<vmem>>, vector<1x1x128xf32>
    %25 = vector.shape_cast %24 : vector<1x1x128xf32> to vector<1x128xf32>
    %26 = vector.broadcast %25 : vector<1x128xf32> to vector<16x128xf32>
    %27 = arith.addf %23, %26 : vector<16x128xf32>
    %cst_16 = arith.constant 0.000000e+00 : f32
    %28 = vector.broadcast %cst_16 : f32 to vector<16x128xf32>
    %29 = arith.maximumf %27, %28 : vector<16x128xf32>
    %cst_17 = arith.constant 0.000000e+00 : f32
    %30 = vector.broadcast %cst_17 : f32 to vector<1x128xf32>
    %31 = tpu.concatenate %30, %29, %30 in 0 : vector<1x128xf32>, vector<16x128xf32>, vector<1x128xf32> -> vector<18x128xf32>
    %32 = vector.extract_strided_slice %31 {offsets = [0, 0], sizes = [16, 128], strides = [1, 1]} : vector<18x128xf32> to vector<16x128xf32>
    %33 = vector.extract_strided_slice %31 {offsets = [1, 0], sizes = [16, 128], strides = [1, 1]} : vector<18x128xf32> to vector<16x128xf32>
    %34 = vector.extract_strided_slice %31 {offsets = [2, 0], sizes = [16, 128], strides = [1, 1]} : vector<18x128xf32> to vector<16x128xf32>
    %35 = tpu.concatenate %32, %33, %34 in 1 : vector<16x128xf32>, vector<16x128xf32>, vector<16x128xf32> -> vector<16x384xf32>
    %c0_18 = arith.constant 0 : index
    %c0_19 = arith.constant 0 : index
    %36 = vector.load %arg6[%c0_18, %c0_19] : memref<384x128xf32, #tpu.memory_space<vmem>>, vector<384x128xf32>
    %cst_20 = arith.constant dense<0.000000e+00> : vector<16x128xf32>
    %37 = tpu.matmul %35, %36, %cst_20 {dimension_numbers = #tpu.dot_dimension_numbers<[1], [0], [0], [1], [0, 0, 1, 1], [], []>} : vector<16x384xf32>, vector<384x128xf32>, vector<16x128xf32> -> vector<16x128xf32>
    %c0_21 = arith.constant 0 : index
    %c0_22 = arith.constant 0 : index
    %38 = vector.load %arg7[%c0_21, %c0_22] : memref<1x128xf32, #tpu.memory_space<vmem>>, vector<1x128xf32>
    %39 = vector.broadcast %38 : vector<1x128xf32> to vector<16x128xf32>
    %40 = arith.addf %37, %39 : vector<16x128xf32>
    %c0_23 = arith.constant 0 : index
    %c0_24 = arith.constant 0 : index
    %c0_25 = arith.constant 0 : index
    %41 = vector.load %arg8[%c0_23, %c0_24, %c0_25] : memref<1x16x128xf32, #tpu.memory_space<vmem>>, vector<1x16x128xf32>
    %42 = vector.shape_cast %41 : vector<1x16x128xf32> to vector<16x128xf32>
    %43 = vector.shape_cast %40 : vector<16x128xf32> to vector<1x16x128xf32>
    tpu.vector_store %arg8[%c0_23, %c0_24, %c0_25], %43 {strides = array<i32>} : memref<1x16x128xf32, #tpu.memory_space<vmem>>, vector<1x16x128xf32>,
    return
  }
  func.func @transform_0(%arg0: i32) -> (i32, i32, i32) {
    %c0_i32 = arith.constant 0 : i32
    %c0_i32_0 = arith.constant 0 : i32
    %c0_i32_1 = arith.constant 0 : i32
    return %arg0, %c0_i32, %c0_i32_0 : i32, i32, i32
  }
  func.func @transform_1(%arg0: i32) -> (i32, i32) {
    %c0_i32 = arith.constant 0 : i32
    %c0_i32_0 = arith.constant 0 : i32
    %c0_i32_1 = arith.constant 0 : i32
    return %c0_i32, %c0_i32_0 : i32, i32
  }
  func.func @transform_2(%arg0: i32) -> (i32, i32) {
    %c0_i32 = arith.constant 0 : i32
    %c0_i32_0 = arith.constant 0 : i32
    %c0_i32_1 = arith.constant 0 : i32
    return %c0_i32, %c0_i32_0 : i32, i32
  }
  func.func @transform_3(%arg0: i32) -> (i32, i32, i32) {
    %c0_i32 = arith.constant 0 : i32
    %c0_i32_0 = arith.constant 0 : i32
    %c0_i32_1 = arith.constant 0 : i32
    %c0_i32_2 = arith.constant 0 : i32
    return %c0_i32, %c0_i32_0, %c0_i32_1 : i32, i32, i32
  }
  func.func @transform_4(%arg0: i32) -> (i32, i32, i32) {
    %c0_i32 = arith.constant 0 : i32
    %c0_i32_0 = arith.constant 0 : i32
    %c0_i32_1 = arith.constant 0 : i32
    %c0_i32_2 = arith.constant 0 : i32
    return %c0_i32, %c0_i32_0, %c0_i32_1 : i32, i32, i32
  }
  func.func @transform_5(%arg0: i32) -> (i32, i32) {
    %c0_i32 = arith.constant 0 : i32
    %c0_i32_0 = arith.constant 0 : i32
    %c0_i32_1 = arith.constant 0 : i32
    return %c0_i32, %c0_i32_0 : i32, i32
  }
  func.func @transform_6(%arg0: i32) -> (i32, i32) {
    %c0_i32 = arith.constant 0 : i32
    %c0_i32_0 = arith.constant 0 : i32
    %c0_i32_1 = arith.constant 0 : i32
    return %c0_i32, %c0_i32_0 : i32, i32
  }
  func.func @transform_7(%arg0: i32) -> (i32, i32, i32) {
    %c0_i32 = arith.constant 0 : i32
    %c0_i32_0 = arith.constant 0 : i32
    %c0_i32_1 = arith.constant 0 : i32
    return %arg0, %c0_i32, %c0_i32_0 : i32, i32, i32
  }
}

</mosaic_0001>

<bundles_post_ra>
// kernel: separate_head_forward.1
= control target key start
LH: loop header
LB: loop body
LE: loop exit
PB: predicated region body
PF: predicated region fallthrough
CT: control target
= control target key end

     0   :  { %12 = vsyncpa [#allocation3], 0  ;;  %s1731_s0 = inlined_call_operand.vmem [shape: f32[2,16,128], index: 0, kind: input, shape index: {}]   ;;  %s1732_s1 = inlined_call_operand.hbm [shape: f32[384,128], index: 1, kind: input, shape index: {}]   ;;  %s1733_s2 = inlined_call_operand.vmem [shape: f32[1,128], index: 2, kind: input, shape index: {}]   ;;  %s1734_s3 = inlined_call_operand.hbm [shape: f32[1,384,128], index: 3, kind: input, shape index: {}]   ;;  %s1735_s4 = inlined_call_operand.vmem [shape: f32[1,1,128], index: 4, kind: input, shape index: {}]   ;;  %s1736_s5 = inlined_call_operand.hbm [shape: f32[384,128], index: 5, kind: input, shape index: {}]   ;;  %s1737_s6 = inlined_call_operand.vmem [shape: f32[1,128], index: 6, kind: input, shape index: {}]   ;;  %s1738_s7 = inlined_call_operand.vmem [shape: f32[2,16,128], index: 7, kind: output, shape index: {}]  }
   0x1   :  { %13 = vsyncpa [#allocation5], 0  ;;  %s1594_s24 = smov 0  }
   0x2 LB: > { %s1600_s25 = sadd.s32 4294967295, %s1547_s24   ;;  %p1115_p0 = scmp.ge.s32.totalorder %s1547_s24, 1  ;;  %s1547_s24 = sphi %s1594_s24, %s19_s24  }
   0x3   : > { %p202_p1 = scmp.lt.s32.totalorder %s1547_s24, 3  ;;  %p1436_p2 = scmp.eq.s32.totalorder %s1600_s25, 0 }
   0x4   : > { %s1549_s27 = smov [#allocation4]   ;;  %s1550_s29 = smov [#allocation2]  }
   0x5   : > { %p1605_p3 = pnand %p1115_p0, %p202_p1  ;;  %s230_s28 = sshll.u32 %s1549_s27, 4  ;;  %s231_s28 = int_to_ptr.vmem [resolvable:$true] %s230_s28 }
   0x6   : > { %s214_s30 = sshll.u32 %s1550_s29, 4  ;;  %s1551_s9 = smov [#allocation6]   ;;  %s215_s30 = int_to_ptr.vmem [resolvable:$true] %s214_s30 }
   0x7   : > { %p1426_p4 = pneg %p1605_p3  ;;  %s246_s10 = sshll.u32 %s1551_s9, 4  ;;  %s1617_s10 = int_to_ptr.vmem [resolvable:$true] %s246_s10 }
   0x8   : > { %s1466_s11 = scalar_lea.vmem %s231_s28, 6144  ;;  %p1474_p10 = scmp.lt.s32.totalorder %s231_s28, %s231_s28 }
   0x9   : > { %p1613_p5 = pnand %p1436_p2, %p1426_p4  ;;  %p1467_p7 = scmp.ne.s32.totalorder %s231_s28, %s1466_s11 }
   0xa   : > { %p1475_p11 = scmp.lt.s32.totalorder %s1466_s11, %s1466_s11 }
   0xb   : > { %p1457_p6 = pneg %p1613_p5 }
   0xc   : > { %p1476_p12 = por %p1475_p11, %p1474_p10 }
   0xd   : > { %p1469_p8 = pnand %p1467_p7, %p1457_p6 }
   0xf   : > { %p1470_p9 = pneg %p1469_p8 }
  0x11   : > { %p1477_p13 = pnand %p1476_p12, %p1470_p9 }
  0x13   : > { %1480 = shalt.err (!%p1477_p13)
}
  0x14   : > { %s1552_s12 = smov 128   ;;  %s1553_s13 = smov 8  }
  0x15   : > { %1432 = dma.hbm_to_vmem [thread:$0]  (!%p1613_p5), %s1734_s3, 6144, %s231_s28, [#allocation5], %s1552_s12, %s1552_s12, %s1553_s13  }
  0x16   : > { %s1492_s16 = scalar_lea.vmem %s215_s30, 6144  ;;  %p1500_p7 = scmp.lt.s32.totalorder %s215_s30, %s215_s30 }
  0x17   : > { %p1493_p0 = scmp.ne.s32.totalorder %s215_s30, %s1492_s16  ;;  %p1501_p8 = scmp.lt.s32.totalorder %s1492_s16, %s1492_s16 }
  0x19   : > { %p1495_p1 = pnand %p1493_p0, %p1457_p6  ;;  %p1502_p10 = por %p1501_p8, %p1500_p7 }
  0x1b   : > { %p1496_p4 = pneg %p1495_p1 }
  0x1d   : > { %p1503_p9 = pnand %p1502_p10, %p1496_p4 }
  0x1f   : > { %1506 = shalt.err (!%p1503_p9)
}
  0x20   : > { %1429 = dma.hbm_to_vmem [thread:$0]  (!%p1613_p5), %s1732_s1, 6144, %s215_s30, [#allocation3], %s1552_s12, %s1552_s12, %s1553_s13  }
  0x21   : > { %s1518_s19 = scalar_lea.vmem %s1617_s10, 6144  ;;  %p1526_p0 = scmp.lt.s32.totalorder %s1617_s10, %s1617_s10 }
  0x22   : > { %p1519_p11 = scmp.ne.s32.totalorder %s1617_s10, %s1518_s19  ;;  %p1527_p1 = scmp.lt.s32.totalorder %s1518_s19, %s1518_s19 }
  0x24   : > { %p1521_p12 = pnand %p1519_p11, %p1457_p6  ;;  %p1528_p4 = por %p1527_p1, %p1526_p0 }
  0x26   : > { %p1522_p13 = pneg %p1521_p12 }
  0x28   : > { %p1529_p7 = pnand %p1528_p4, %p1522_p13 }
  0x2a   : > { %1532 = shalt.err (!%p1529_p7)
}
  0x2b   : > { %1435 = dma.hbm_to_vmem [thread:$0]  (!%p1613_p5), %s1736_s5, 6144, %s1617_s10, [#allocation5], %s1552_s12, %s1552_s12, %s1553_s13  }
  0x2c   : > { %273 = sbr.rel (%p1605_p3) target bundleno = 719 (0x2cf), region = 48 }
  0x31   : > { %1538 = dma.done.wait (%p1436_p2), [#allocation3], 6144  }
  0x32   : > { %1540 = vsyncadd (%p1436_p2), [#allocation3], 4294961152 }
  0x33   : > { %1542 = dma.done.wait (%p1436_p2), [#allocation5], 12288  }
  0x34   : > { %1544 = vsyncadd (%p1436_p2), [#allocation5], 4294955008  ;;  %v385_v0 = vld [vmem:[#allocation2 + $0xf8] sm:$0xff]  ;;  %v384_v2 = vld [vmem:[#allocation2 + $0xf0] sm:$0xff]  ;;  %p313_p3 = scmp.lt.s32.totalorder %s1600_s25, 1  ;;  %vm327_vm0 = vcmask 1040384  }
  0x35   : > { %v369_v1 = vld [vmem:[#allocation2 + $0x78] sm:$0xff]  ;;  %1141 = vmatprep.subr.mxu0 %v385_v0  ;;  %v368_v3 = vld [vmem:[#allocation2 + $0x70] sm:$0xff]  ;;  %v383_v5 = vld [vmem:[#allocation2 + $0xe8] sm:$0xff]  ;;  %vm338_vm1 = vcmask 1046528   ;;  %vm346_vm2 = vcmask 1045504  }
  0x36   : > { %v401_v4 = vld [vmem:[#allocation2 + $0x178] sm:$0xff]  ;;  %1142 = vmatpush3.msra.mxu0 %v369_v1  ;;  %v400_v6 = vld [vmem:[#allocation2 + $0x170] sm:$0xff]  ;;  %v367_v7 = vld [vmem:[#allocation2 + $0x68] sm:$0xff]  ;;  %s1744_s25 = smov (!%p313_p3, %s1600_s25), 1 }
  0x37   : > { %1309 = vmatprep.subr.mxu1 %v401_v4  ;;  %1143 = vmatprep.subr.mxu0 %v384_v2  ;;  %v399_v8 = vld [vmem:[#allocation2 + $0x168] sm:$0xff]  ;;  %v382_v9 = vld [vmem:[#allocation2 + $0xe0] sm:$0xff]  ;;  %v381_v12 = vld [vmem:[#allocation2 + $0xd8] sm:$0xff]  ;;  %s1139_s22 = sshll.u32 %s1744_s25, 4 }
  0x38   : > { %1310 = vmatpush3.msra.mxu1 %v401_v4  ;;  %1144 = vmatpush3.msra.mxu0 %v368_v3  ;;  %v366_v10 = vld [vmem:[#allocation2 + $0x60] sm:$0xff]  ;;  %v365_v13 = vld [vmem:[#allocation2 + $0x58] sm:$0xff]  ;;  %v380_v15 = vld [vmem:[#allocation2 + $0xd0] sm:$0xff]  ;;  %s317_s27 = scalar_lea.vmem %s1731_s0, %s1139_s22  ;;  %s322_s13 = scalar_lea.vmem %s1738_s7, %s1139_s22 }
  0x39   : > { %1311 = vmatprep.subr.mxu1 %v400_v6  ;;  %1145 = vmatprep.subr.mxu0 %v383_v5  ;;  %v398_v11 = vld [vmem:[#allocation2 + $0x160] sm:$0xff]  ;;  %v397_v14 = vld [vmem:[#allocation2 + $0x158] sm:$0xff]  ;;  %v364_v16 = vld [vmem:[#allocation2 + $0x50] sm:$0xff] }
  0x3a   : > { %1312 = vmatpush3.msra.mxu1 %v400_v6  ;;  %1146 = vmatpush3.msra.mxu0 %v367_v7  ;;  %v396_v17 = vld [vmem:[#allocation2 + $0x150] sm:$0xff]  ;;  %v379_v18 = vld [vmem:[#allocation2 + $0xc8] sm:$0xff]  ;;  %v378_v21 = vld [vmem:[#allocation2 + $0xc0] sm:$0xff] }
  0x3b   : > { %1313 = vmatprep.subr.mxu1 %v399_v8  ;;  %1147 = vmatprep.subr.mxu0 %v382_v9  ;;  %v363_v19 = vld [vmem:[#allocation2 + $0x48] sm:$0xff]  ;;  %v362_v22 = vld [vmem:[#allocation2 + $0x40] sm:$0xff]  ;;  %v377_v24 = vld [vmem:[#allocation2 + $0xb8] sm:$0xff] }
  0x3c   : > { %1314 = vmatpush3.msra.mxu1 %v399_v8  ;;  %1148 = vmatpush3.msra.mxu0 %v366_v10  ;;  %v395_v20 = vld [vmem:[#allocation2 + $0x148] sm:$0xff]  ;;  %v394_v23 = vld [vmem:[#allocation2 + $0x140] sm:$0xff]  ;;  %v361_v25 = vld [vmem:[#allocation2 + $0x38] sm:$0xff] }
  0x3d   : > { %1315 = vmatprep.subr.mxu1 %v398_v11  ;;  %1149 = vmatprep.subr.mxu0 %v381_v12  ;;  %v393_v26 = vld [vmem:[#allocation2 + $0x138] sm:$0xff]  ;;  %v323_v27 = vld [vmem:[%s317_s27] sm:$0xff]  ;;  %v324_v28 = vld [vmem:[%s317_s27 + $0x8] sm:$0xff] }
  0x3e   : > { %1316 = vmatpush3.msra.mxu1 %v398_v11  ;;  %1150 = vmatpush3.msra.mxu0 %v365_v13  ;;  %v376_v29 = vld [vmem:[#allocation2 + $0xb0] sm:$0xff]  ;;  %v1672_v30 = vrot.slane %v323_v27, 7  ;;  %v329_v31 = vrot.slane %v324_v28, 7  ;;  %v375_v34 = vld [vmem:[#allocation2 + $0xa8] sm:$0xff]  ;;  %v374_v39 = vld [vmem:[#allocation2 + $0xa0] sm:$0xff] }
  0x3f   : > { %1317 = vmatprep.subr.mxu1 %v397_v14  ;;  %1151 = vmatprep.subr.mxu0 %v380_v15  ;;  %v360_v32 = vld [vmem:[#allocation2 + $0x30] sm:$0xff]  ;;  %v359_v35 = vld [vmem:[#allocation2 + $0x28] sm:$0xff]  ;;  %v358_v40 = vld [vmem:[#allocation2 + $0x20] sm:$0xff] }
  0x40   : > { %1318 = vmatpush3.msra.mxu1 %v397_v14  ;;  %1152 = vmatpush3.msra.mxu0 %v364_v16  ;;  %v392_v33 = vld [vmem:[#allocation2 + $0x130] sm:$0xff]  ;;  %v391_v36 = vld [vmem:[#allocation2 + $0x128] sm:$0xff]  ;;  %v1676_v37 = vsel %vm327_vm0, %v1672_v30, %v329_v31  ;;  %v334_v38 = vsel %vm327_vm0, 0.0, %v1672_v30  ;;  %v390_v41 = vld [vmem:[#allocation2 + $0x120] sm:$0xff]  ;;  %v335_v48 = vsel %vm327_vm0, %v329_v31, 0.0 }
  0x41   : > { %1319 = vmatprep.subr.mxu1 %v396_v17  ;;  %1153 = vmatprep.subr.mxu0 %v379_v18  ;;  %v373_v42 = vld [vmem:[#allocation2 + $0x98] sm:$0xff]  ;;  %v339_v43 = vrot.slane %v334_v38, 1  ;;  %v340_v44 = vrot.slane %v1676_v37, 1  ;;  %v372_v47 = vld [vmem:[#allocation2 + $0x90] sm:$0xff]  ;;  %v371_v51 = vld [vmem:[#allocation2 + $0x88] sm:$0xff]  ;;  %v342_v54 = vrot.slane %v335_v48, 1 }
  0x42   : > { %1320 = vmatpush3.msra.mxu1 %v396_v17  ;;  %1154 = vmatpush3.msra.mxu0 %v363_v19  ;;  %v357_v45 = vld [vmem:[#allocation2 + $0x18] sm:$0xff]  ;;  %v356_v49 = vld [vmem:[#allocation2 + $0x10] sm:$0xff]  ;;  %v355_v53 = vld [vmem:[#allocation2 + $0x8] sm:$0xff]  ;;  %v347_v57 = vrot.slane %v334_v38, 2  ;;  %v348_v58 = vrot.slane %v1676_v37, 2  ;;  %v350_v60 = vrot.slane %v335_v48, 2 }
  0x43   : > { %1321 = vmatprep.subr.mxu1 %v395_v20  ;;  %1155 = vmatprep.subr.mxu0 %v378_v21  ;;  %v389_v46 = vld [vmem:[#allocation2 + $0x118] sm:$0xff]  ;;  %v388_v50 = vld [vmem:[#allocation2 + $0x110] sm:$0xff]  ;;  %v341_v52 = vsel %vm338_vm1, %v339_v43, %v340_v44  ;;  %v370_v55 = vld [vmem:[#allocation2 + $0x80] sm:$0xff]  ;;  %v343_v63 = vsel %vm338_vm1, %v340_v44, %v342_v54 }
  0x44   : > { %1322 = vmatpush3.msra.mxu1 %v395_v20  ;;  %1156 = vmatpush3.msra.mxu0 %v362_v22  ;;  %v387_v56 = vld [vmem:[#allocation2 + $0x108] sm:$0xff]  ;;  %v354_v59 = vld [vmem:[#allocation2] sm:$0xff]  ;;  %vm1685_vm3 = vmneg %vm327_vm0  ;;  %v349_v0 = vsel %vm346_vm2, %v347_v57, %v348_v58  ;;  %v351_v2 = vsel %vm346_vm2, %v348_v58, %v350_v60 }
  0x45   : > { %1323 = vmatprep.subr.mxu1 %v394_v23  ;;  %1157 = vmatprep.subr.mxu0 %v377_v24  ;;  %v386_v62 = vld [vmem:[#allocation2 + $0x100] sm:$0xff]  ;;  %v618_v1 = vld [vmem:[#allocation4 + $0xf8] sm:$0xff]  ;;  %v633_v5 = vld [vmem:[#allocation4 + $0x170] sm:$0xff] }
  0x46   : > { %1324 = vmatpush3.msra.mxu1 %v394_v23  ;;  %1158 = vmatpush3.msra.mxu0 %v361_v25  ;;  %v634_v3 = vld [vmem:[#allocation4 + $0x178] sm:$0xff]  ;;  %v617_v6 = vld [vmem:[#allocation4 + $0xf0] sm:$0xff]  ;;  %v632_v8 = vld [vmem:[#allocation4 + $0x168] sm:$0xff] }
  0x47   : > { %1325 = vmatprep.subr.mxu1 %v393_v26  ;;  %1159 = vmatprep.subr.mxu0 %v376_v29  ;;  %v602_v4 = vld [vmem:[#allocation4 + $0x78] sm:$0xff]  ;;  %v601_v7 = vld [vmem:[#allocation4 + $0x70] sm:$0xff]  ;;  %v616_v9 = vld [vmem:[#allocation4 + $0xe8] sm:$0xff] }
  0x48   : > { %1326 = vmatpush3.msra.mxu1 %v393_v26  ;;  %1160 = vmatpush3.msra.mxu0 %v360_v32  ;;  %v600_v10 = vld [vmem:[#allocation4 + $0x68] sm:$0xff]  ;;  %v631_v11 = vld [vmem:[#allocation4 + $0x160] sm:$0xff]  ;;  %v630_v14 = vld [vmem:[#allocation4 + $0x158] sm:$0xff] }
  0x49   : > { %1327 = vmatprep.subr.mxu1 %v392_v33  ;;  %1161 = vmatprep.subr.mxu0 %v375_v34  ;;  %v615_v12 = vld [vmem:[#allocation4 + $0xe0] sm:$0xff]  ;;  %v614_v15 = vld [vmem:[#allocation4 + $0xd8] sm:$0xff]  ;;  %v613_v17 = vld [vmem:[#allocation4 + $0xd0] sm:$0xff] }
  0x4a   : > { %1328 = vmatpush3.msra.mxu1 %v392_v33  ;;  %1162 = vmatpush3.msra.mxu0 %v359_v35  ;;  %v599_v13 = vld [vmem:[#allocation4 + $0x60] sm:$0xff]  ;;  %v598_v16 = vld [vmem:[#allocation4 + $0x58] sm:$0xff]  ;;  %v629_v18 = vld [vmem:[#allocation4 + $0x150] sm:$0xff] }
  0x4b   : > { %1329 = vmatprep.subr.mxu1 %v391_v36  ;;  %1163 = vmatprep.subr.mxu0 %v374_v39  ;;  %v597_v19 = vld [vmem:[#allocation4 + $0x50] sm:$0xff]  ;;  %v612_v20 = vld [vmem:[#allocation4 + $0xc8] sm:$0xff]  ;;  %v611_v23 = vld [vmem:[#allocation4 + $0xc0] sm:$0xff] }
  0x4c   : > { %1330 = vmatpush3.msra.mxu1 %v391_v36  ;;  %1164 = vmatpush3.msra.mxu0 %v358_v40  ;;  %v628_v21 = vld [vmem:[#allocation4 + $0x148] sm:$0xff]  ;;  %v627_v24 = vld [vmem:[#allocation4 + $0x140] sm:$0xff]  ;;  %v610_v26 = vld [vmem:[#allocation4 + $0xb8] sm:$0xff] }
  0x4d   : > { %1331 = vmatprep.subr.mxu1 %v390_v41  ;;  %1165 = vmatprep.subr.mxu0 %v373_v42  ;;  %v596_v22 = vld [vmem:[#allocation4 + $0x48] sm:$0xff]  ;;  %v595_v25 = vld [vmem:[#allocation4 + $0x40] sm:$0xff]  ;;  %v626_v27 = vld [vmem:[#allocation4 + $0x138] sm:$0xff] }
  0x4e   : > { %1332 = vmatpush3.msra.mxu1 %v390_v41  ;;  %1166 = vmatpush3.msra.mxu0 %v357_v45  ;;  %v594_v28 = vld [vmem:[#allocation4 + $0x38] sm:$0xff]  ;;  %v609_v29 = vld [vmem:[#allocation4 + $0xb0] sm:$0xff]  ;;  %v608_v32 = vld [vmem:[#allocation4 + $0xa8] sm:$0xff] }
  0x4f   : > { %1333 = vmatprep.subr.mxu1 %v389_v46  ;;  %1167 = vmatprep.subr.mxu0 %v372_v47  ;;  %v593_v31 = vld [vmem:[#allocation4 + $0x30] sm:$0xff]  ;;  %v624_v33 = vld [vmem:[#allocation4 + $0x128] sm:$0xff]  ;;  %v607_v35 = vld [vmem:[#allocation4 + $0xa0] sm:$0xff] }
  0x50   : > { %1334 = vmatpush3.msra.mxu1 %v389_v46  ;;  %1168 = vmatpush3.msra.mxu0 %v356_v49  ;;  %v592_v34 = vld [vmem:[#allocation4 + $0x28] sm:$0xff]  ;;  %v623_v36 = vld [vmem:[#allocation4 + $0x120] sm:$0xff]  ;;  %v606_v38 = vld [vmem:[#allocation4 + $0x98] sm:$0xff] }
  0x51   : > { %1335 = vmatprep.subr.mxu1 %v388_v50  ;;  %1169 = vmatprep.subr.mxu0 %v371_v51  ;;  %v622_v39 = vld [vmem:[#allocation4 + $0x118] sm:$0xff]  ;;  %v605_v41 = vld [vmem:[#allocation4 + $0x90] sm:$0xff]  ;;  %v604_v44 = vld [vmem:[#allocation4 + $0x88] sm:$0xff] }
  0x52   : > { %473 = vmatprep.mubr.f32.mxu0 %v341_v52  ;;  %1170 = vmatpush3.msra.mxu0 %v355_v53  ;;  %v590_v40 = vld [vmem:[#allocation4 + $0x18] sm:$0xff]  ;;  %v621_v42 = vld [vmem:[#allocation4 + $0x110] sm:$0xff]  ;;  %v620_v45 = vld [vmem:[#allocation4 + $0x108] sm:$0xff] }
  0x53   : > { %1336 = vmatpush3.msra.mxu1 %v388_v50  ;;  %1171 = vmatprep.subr.mxu0 %v370_v55  ;;  %v589_v43 = vld [vmem:[#allocation4 + $0x10] sm:$0xff]  ;;  %v588_v46 = vld [vmem:[#allocation4 + $0x8] sm:$0xff]  ;;  %v603_v47 = vld [vmem:[#allocation4 + $0x80] sm:$0xff] }
  0x54   : > { %1337 = vmatprep.subr.mxu1 %v387_v56  ;;  %1172 = vmatpush3.msra.mxu0 %v354_v59  ;;  %v619_v48 = vld [vmem:[#allocation4 + $0x100] sm:$0xff]  ;;  %v851_v50 = vld [vmem:[#allocation6 + $0xf8] sm:$0xff] }
  0x55   : > { %1338 = vmatpush3.msra.mxu1 %v387_v56  ;;  %1130 = vmatmul.mubr.msk.f32.vlgmr.msra.gmra.mxu0 %vm1685_vm3, %v1672_v30  ;;  %v625_v30 = vld [vmem:[#allocation4 + $0x130] sm:$0xff]  ;;  %v587_v49 = vld [vmem:[#allocation4] sm:$0xff]  ;;  %v867_v51 = vld [vmem:[#allocation6 + $0x178] sm:$0xff] }
  0x56   : > { %1339 = vmatprep.subr.mxu1 %v386_v62  ;;  %478 = vmatprep.mubr.f32.mxu0 %v343_v63  ;;  %v1128_v54 = vld [vmem:[%s1733_s2] ss:$0 sm:$0xff] }
  0x57   : > { %1340 = vmatpush3.msra.mxu1 %v386_v62  ;;  %1341 = vmatprep.mubr.f32.mxu1 %v349_v0 }
  0x58   : > { %1197 = vmatprep.subr.mxu0 %v618_v1  ;;  %1342 = vmatmul.mubr.f32.vlgmr.msra.gmra.mxu1 %v351_v2 }
  0x59   : > { %1344 = vmatprep.subr.mxu1 %v634_v3  ;;  %479 = vmatmul.mubr.f32.gmra.mxu0 %v1676_v37  ;;  %v591_v37 = vld [vmem:[#allocation4 + $0x20] sm:$0xff] }
  0x5a   : > { %1345 = vmatpush3.msra.mxu1 %v634_v3  ;;  %1198 = vmatpush3.msra.mxu0 %v602_v4 }
  0x5b   : > { %1346 = vmatprep.subr.mxu1 %v633_v5  ;;  %1199 = vmatprep.subr.mxu0 %v617_v6 }
  0x5c   : > { %1347 = vmatpush3.msra.mxu1 %v633_v5  ;;  %1200 = vmatpush3.msra.mxu0 %v601_v7 }
  0x5d   : > { %1348 = vmatprep.subr.mxu1 %v632_v8  ;;  %1201 = vmatprep.subr.mxu0 %v616_v9 }
  0x5e   : > { %1349 = vmatpush3.msra.mxu1 %v632_v8  ;;  %1202 = vmatpush3.msra.mxu0 %v600_v10 }
  0x5f   : > { %1350 = vmatprep.subr.mxu1 %v631_v11  ;;  %1203 = vmatprep.subr.mxu0 %v615_v12 }
  0x60   : > { %1351 = vmatpush3.msra.mxu1 %v631_v11  ;;  %1204 = vmatpush3.msra.mxu0 %v599_v13 }
  0x61   : > { %1352 = vmatprep.subr.mxu1 %v630_v14  ;;  %1205 = vmatprep.subr.mxu0 %v614_v15 }
  0x62   : > { %1353 = vmatpush3.msra.mxu1 %v630_v14  ;;  %1206 = vmatpush3.msra.mxu0 %v598_v16 }
  0x63   : > { %1207 = vmatprep.subr.mxu0 %v613_v17  ;;  %1354 = vmatprep.subr.mxu1 %v629_v18 }
  0x64   : > { %1208 = vmatpush3.msra.mxu0 %v597_v19  ;;  %1355 = vmatpush3.msra.mxu1 %v629_v18  ;;  %v835_v18 = vld [vmem:[#allocation6 + $0x78] sm:$0xff]  ;;  %v850_v19 = vld [vmem:[#allocation6 + $0xf0] sm:$0xff] }
  0x65   : > { %1209 = vmatprep.subr.mxu0 %v612_v20  ;;  %1356 = vmatprep.subr.mxu1 %v628_v21 }
  0x66   : > { %1210 = vmatpush3.msra.mxu0 %v596_v22  ;;  %1357 = vmatpush3.msra.mxu1 %v628_v21  ;;  %v866_v21 = vld [vmem:[#allocation6 + $0x170] sm:$0xff] }
  0x67   : > { %1211 = vmatprep.subr.mxu0 %v611_v23  ;;  %1358 = vmatprep.subr.mxu1 %v627_v24  ;;  %v834_v22 = vld [vmem:[#allocation6 + $0x70] sm:$0xff]  ;;  %v849_v23 = vld [vmem:[#allocation6 + $0xe8] sm:$0xff] }
  0x68   : > { %1212 = vmatpush3.msra.mxu0 %v595_v25  ;;  %1359 = vmatpush3.msra.mxu1 %v627_v24  ;;  %v865_v24 = vld [vmem:[#allocation6 + $0x168] sm:$0xff] }
  0x69   : > { %1213 = vmatprep.subr.mxu0 %v610_v26  ;;  %1360 = vmatprep.subr.mxu1 %v626_v27  ;;  %v833_v25 = vld [vmem:[#allocation6 + $0x68] sm:$0xff]  ;;  %v848_v26 = vld [vmem:[#allocation6 + $0xe0] sm:$0xff] }
  0x6a   : > { %1214 = vmatpush3.msra.mxu0 %v594_v28  ;;  %1361 = vmatpush3.msra.mxu1 %v626_v27  ;;  %v864_v27 = vld [vmem:[#allocation6 + $0x160] sm:$0xff] }
  0x6b   : > { %1215 = vmatprep.subr.mxu0 %v609_v29  ;;  %1362 = vmatprep.subr.mxu1 %v625_v30  ;;  %v832_v28 = vld [vmem:[#allocation6 + $0x60] sm:$0xff]  ;;  %v847_v29 = vld [vmem:[#allocation6 + $0xd8] sm:$0xff] }
  0x6c   : > { %1216 = vmatpush3.msra.mxu0 %v593_v31  ;;  %1363 = vmatpush3.msra.mxu1 %v625_v30  ;;  %v863_v30 = vld [vmem:[#allocation6 + $0x158] sm:$0xff] }
  0x6d   : > { %1217 = vmatprep.subr.mxu0 %v608_v32  ;;  %1364 = vmatprep.subr.mxu1 %v624_v33  ;;  %v831_v31 = vld [vmem:[#allocation6 + $0x58] sm:$0xff]  ;;  %v846_v32 = vld [vmem:[#allocation6 + $0xd0] sm:$0xff] }
  0x6e   : > { %1218 = vmatpush3.msra.mxu0 %v592_v34  ;;  %1365 = vmatpush3.msra.mxu1 %v624_v33  ;;  %v862_v33 = vld [vmem:[#allocation6 + $0x150] sm:$0xff] }
  0x6f   : > { %1219 = vmatprep.subr.mxu0 %v607_v35  ;;  %1366 = vmatprep.subr.mxu1 %v623_v36  ;;  %v830_v34 = vld [vmem:[#allocation6 + $0x50] sm:$0xff]  ;;  %v845_v35 = vld [vmem:[#allocation6 + $0xc8] sm:$0xff] }
  0x70   : > { %1220 = vmatpush3.msra.mxu0 %v591_v37  ;;  %1367 = vmatpush3.msra.mxu1 %v623_v36  ;;  %v861_v36 = vld [vmem:[#allocation6 + $0x148] sm:$0xff] }
  0x71   : > { %1221 = vmatprep.subr.mxu0 %v606_v38  ;;  %1368 = vmatprep.subr.mxu1 %v622_v39  ;;  %v829_v37 = vld [vmem:[#allocation6 + $0x48] sm:$0xff]  ;;  %v844_v38 = vld [vmem:[#allocation6 + $0xc0] sm:$0xff] }
  0x72   : > { %1222 = vmatpush3.msra.mxu0 %v590_v40  ;;  %1369 = vmatpush3.msra.mxu1 %v622_v39  ;;  %v860_v39 = vld [vmem:[#allocation6 + $0x140] sm:$0xff] }
  0x73   : > { %1223 = vmatprep.subr.mxu0 %v605_v41  ;;  %1370 = vmatprep.subr.mxu1 %v621_v42  ;;  %v828_v40 = vld [vmem:[#allocation6 + $0x40] sm:$0xff]  ;;  %v843_v41 = vld [vmem:[#allocation6 + $0xb8] sm:$0xff] }
  0x74   : > { %1224 = vmatpush3.msra.mxu0 %v589_v43  ;;  %1371 = vmatpush3.msra.mxu1 %v621_v42  ;;  %v859_v42 = vld [vmem:[#allocation6 + $0x138] sm:$0xff] }
  0x75   : > { %1225 = vmatprep.subr.mxu0 %v604_v44  ;;  %1372 = vmatprep.subr.mxu1 %v620_v45  ;;  %v827_v43 = vld [vmem:[#allocation6 + $0x38] sm:$0xff]  ;;  %v842_v44 = vld [vmem:[#allocation6 + $0xb0] sm:$0xff] }
  0x76   : > { %1226 = vmatpush3.msra.mxu0 %v588_v46  ;;  %1373 = vmatpush3.msra.mxu1 %v620_v45  ;;  %v858_v45 = vld [vmem:[#allocation6 + $0x130] sm:$0xff] }
  0x77   : > { %1227 = vmatprep.subr.mxu0 %v603_v47  ;;  %1374 = vmatprep.subr.mxu1 %v619_v48  ;;  %v826_v46 = vld [vmem:[#allocation6 + $0x30] sm:$0xff]  ;;  %v841_v47 = vld [vmem:[#allocation6 + $0xa8] sm:$0xff] }
  0x78   : > { %1228 = vmatpush3.msra.mxu0 %v587_v49  ;;  %1375 = vmatpush3.msra.mxu1 %v619_v48  ;;  %v857_v48 = vld [vmem:[#allocation6 + $0x128] sm:$0xff] }
  0x79   : > { %1253 = vmatprep.subr.mxu0 %v851_v50  ;;  %1379 = vmatprep.subr.mxu1 %v867_v51  ;;  %v825_v49 = vld [vmem:[#allocation6 + $0x28] sm:$0xff]  ;;  %v840_v50 = vld [vmem:[#allocation6 + $0xa0] sm:$0xff] }
 0x115   : > { %v1173_v52 = vpop.f32.mrf.mxu0 }
 0x117   : > { %v1174_v53 = vpop.f32.mrf.mxu0 }
 0x118   : > { %v1175_v55 = vadd.f32 %v1174_v53, %v1173_v52  ;;  %v1343_v56 = vpop.f32.mrf.mxu1  ;;  %v824_v52 = vld [vmem:[#allocation6 + $0x20] sm:$0xff]  ;;  %v839_v53 = vld [vmem:[#allocation6 + $0x98] sm:$0xff] }
 0x119   : > { %v1176_v57 = vpop.f32.mrf.mxu0 }
 0x11a   : > { %v476_v58 = vadd.f32 %v1175_v55, %v1128_v54  ;;  %v550_v59 = vpop.f32.mrf.mxu1  ;;  %v823_v55 = vld [vmem:[#allocation6 + $0x18] sm:$0xff] }
 0x11b   : > { %v1177_v60 = vpop.f32.mrf.mxu0 }
 0x11c   : > { %v1178_v62 = vadd.f32 %v1177_v60, %v1176_v57  ;;  %v551_v63 = vadd.f32 %v550_v59, %v476_v58  ;;  %v854_v57 = vld [vmem:[#allocation6 + $0x110] sm:$0xff]  ;;  %v837_v59 = vld [vmem:[#allocation6 + $0x88] sm:$0xff] }
 0x11d   : > { %v822_v58 = vld [vmem:[#allocation6 + $0x10] sm:$0xff]  ;;  %v853_v60 = vld [vmem:[#allocation6 + $0x108] sm:$0xff] }
 0x11e   : > { %v481_v0 = vadd.f32 %v1178_v62, %v1128_v54  ;;  %v559_v1 = vmax.f32 %v551_v63, 0.0  ;;  %v855_v54 = vld [vmem:[#allocation6 + $0x118] sm:$0xff]  ;;  %v821_v62 = vld [vmem:[#allocation6 + $0x8] sm:$0xff]  ;;  %v836_v63 = vld [vmem:[#allocation6 + $0x80] sm:$0xff] }
 0x120   : > { %v556_v2 = vadd.f32 %v1343_v56, %v481_v0  ;;  %v563_v3 = vrot.slane %v559_v1, 7  ;;  %v838_v56 = vld [vmem:[#allocation6 + $0x90] sm:$0xff]  ;;  %v852_v0 = vld [vmem:[#allocation6 + $0x100] sm:$0xff] }
 0x121   : > { %v820_v1 = vld [vmem:[#allocation6] sm:$0xff] }
 0x122   : > { %v560_v4 = vmax.f32 %v556_v2, 0.0  ;;  %v569_v5 = vsel %vm327_vm0, 0.0, %v563_v3 }
 0x123   : > { %v573_v9 = vrot.slane %v569_v5, 1  ;;  %v580_v10 = vrot.slane %v569_v5, 2  ;;  %v1131_v5 = vld [vmem:[%s1735_s4] ss:$0 sm:$0xff] }
 0x124   : > { %v564_v6 = vrot.slane %v560_v4, 7 }
 0x126   : > { %v570_v7 = vsel %vm327_vm0, %v564_v6, 0.0  ;;  %v565_v8 = vsel %vm327_vm0, %v563_v3, %v564_v6 }
 0x127   : > { %v574_v11 = vrot.slane %v565_v8, 1  ;;  %v581_v12 = vrot.slane %v565_v8, 2  ;;  %v583_v13 = vrot.slane %v570_v7, 2  ;;  %v576_v14 = vrot.slane %v570_v7, 1 }
 0x129   : > { %v575_v15 = vsel %vm338_vm1, %v573_v9, %v574_v11  ;;  %v582_v16 = vsel %vm346_vm2, %v580_v10, %v581_v12  ;;  %v584_v17 = vsel %vm346_vm2, %v581_v12, %v583_v13  ;;  %v577_v20 = vsel %vm338_vm1, %v574_v11, %v576_v14 }
 0x12a   : > { %706 = vmatprep.mubr.f32.mxu0 %v575_v15  ;;  %1376 = vmatprep.mubr.f32.mxu1 %v582_v16 }
 0x12b   : > { %1133 = vmatmul.mubr.msk.f32.vlgmr.msra.gmra.mxu0 %vm1685_vm3, %v563_v3  ;;  %1377 = vmatmul.mubr.f32.vlgmr.msra.gmra.mxu1 %v584_v17 }
 0x12c   : > { %711 = vmatprep.mubr.f32.mxu0 %v577_v20  ;;  %1254 = vmatpush3.msra.mxu0 %v835_v18 }
 0x12d   : > { %1380 = vmatpush3.msra.mxu1 %v867_v51  ;;  %1255 = vmatprep.subr.mxu0 %v850_v19  ;;  %v856_v51 = vld [vmem:[#allocation6 + $0x120] sm:$0xff] }
 0x12e   : > { %1381 = vmatprep.subr.mxu1 %v866_v21  ;;  %1256 = vmatpush3.msra.mxu0 %v834_v22 }
 0x12f   : > { %712 = vmatmul.mubr.f32.gmra.mxu0 %v565_v8  ;;  %1382 = vmatpush3.msra.mxu1 %v866_v21 }
 0x130   : > { %1257 = vmatprep.subr.mxu0 %v849_v23  ;;  %1383 = vmatprep.subr.mxu1 %v865_v24 }
 0x131   : > { %1258 = vmatpush3.msra.mxu0 %v833_v25  ;;  %1384 = vmatpush3.msra.mxu1 %v865_v24 }
 0x132   : > { %1259 = vmatprep.subr.mxu0 %v848_v26  ;;  %1385 = vmatprep.subr.mxu1 %v864_v27 }
 0x133   : > { %1260 = vmatpush3.msra.mxu0 %v832_v28  ;;  %1386 = vmatpush3.msra.mxu1 %v864_v27 }
 0x134   : > { %1261 = vmatprep.subr.mxu0 %v847_v29  ;;  %1387 = vmatprep.subr.mxu1 %v863_v30 }
 0x135   : > { %1262 = vmatpush3.msra.mxu0 %v831_v31  ;;  %1388 = vmatpush3.msra.mxu1 %v863_v30 }
 0x136   : > { %1263 = vmatprep.subr.mxu0 %v846_v32  ;;  %1389 = vmatprep.subr.mxu1 %v862_v33 }
 0x137   : > { %1264 = vmatpush3.msra.mxu0 %v830_v34  ;;  %1390 = vmatpush3.msra.mxu1 %v862_v33 }
 0x138   : > { %1265 = vmatprep.subr.mxu0 %v845_v35  ;;  %1391 = vmatprep.subr.mxu1 %v861_v36  ;;  %v1134_v35 = vld [vmem:[%s1737_s6] ss:$0 sm:$0xff] }
 0x139   : > { %1266 = vmatpush3.msra.mxu0 %v829_v37  ;;  %1392 = vmatpush3.msra.mxu1 %v861_v36 }
 0x13a   : > { %1267 = vmatprep.subr.mxu0 %v844_v38  ;;  %1393 = vmatprep.subr.mxu1 %v860_v39 }
 0x13b   : > { %1268 = vmatpush3.msra.mxu0 %v828_v40  ;;  %1394 = vmatpush3.msra.mxu1 %v860_v39 }
 0x13c   : > { %1269 = vmatprep.subr.mxu0 %v843_v41  ;;  %1395 = vmatprep.subr.mxu1 %v859_v42 }
 0x13d   : > { %1270 = vmatpush3.msra.mxu0 %v827_v43  ;;  %1396 = vmatpush3.msra.mxu1 %v859_v42 }
 0x13e   : > { %1271 = vmatprep.subr.mxu0 %v842_v44  ;;  %1397 = vmatprep.subr.mxu1 %v858_v45 }
 0x13f   : > { %1272 = vmatpush3.msra.mxu0 %v826_v46  ;;  %1398 = vmatpush3.msra.mxu1 %v858_v45 }
 0x140   : > { %1273 = vmatprep.subr.mxu0 %v841_v47  ;;  %1399 = vmatprep.subr.mxu1 %v857_v48 }
 0x141   : > { %1274 = vmatpush3.msra.mxu0 %v825_v49  ;;  %1400 = vmatpush3.msra.mxu1 %v857_v48 }
 0x142   : > { %1275 = vmatprep.subr.mxu0 %v840_v50  ;;  %1401 = vmatprep.subr.mxu1 %v856_v51 }
 0x143   : > { %1276 = vmatpush3.msra.mxu0 %v824_v52  ;;  %1402 = vmatpush3.msra.mxu1 %v856_v51 }
 0x144   : > { %1277 = vmatprep.subr.mxu0 %v839_v53  ;;  %1403 = vmatprep.subr.mxu1 %v855_v54 }
 0x145   : > { %1278 = vmatpush3.msra.mxu0 %v823_v55  ;;  %1404 = vmatpush3.msra.mxu1 %v855_v54 }
 0x146   : > { %1279 = vmatprep.subr.mxu0 %v838_v56  ;;  %1405 = vmatprep.subr.mxu1 %v854_v57 }
 0x147   : > { %1280 = vmatpush3.msra.mxu0 %v822_v58  ;;  %1406 = vmatpush3.msra.mxu1 %v854_v57 }
 0x148   : > { %1281 = vmatprep.subr.mxu0 %v837_v59  ;;  %1407 = vmatprep.subr.mxu1 %v853_v60 }
 0x149   : > { %1282 = vmatpush3.msra.mxu0 %v821_v62  ;;  %1408 = vmatpush3.msra.mxu1 %v853_v60 }
 0x14a   : > { %1283 = vmatprep.subr.mxu0 %v836_v63  ;;  %1409 = vmatprep.subr.mxu1 %v852_v0 }
 0x14b   : > { %1284 = vmatpush3.msra.mxu0 %v820_v1  ;;  %1410 = vmatpush3.msra.mxu1 %v852_v0 }
 0x1eb   : > { %v1229_v2 = vpop.f32.mrf.mxu0  ;;  %v1378_v3 = vpop.f32.mrf.mxu1 }
 0x1ed   : > { %v1230_v4 = vpop.f32.mrf.mxu0  ;;  %v783_v9 = vpop.f32.mrf.mxu1 }
 0x1ee   : > { %v1231_v6 = vadd.f32 %v1230_v4, %v1229_v2 }
 0x1ef   : > { %v1232_v7 = vpop.f32.mrf.mxu0 }
 0x1f0   : > { %v709_v8 = vadd.f32 %v1231_v6, %v1131_v5 }
 0x1f1   : > { %v1233_v10 = vpop.f32.mrf.mxu0 }
 0x1f2   : > { %v784_v11 = vadd.f32 %v783_v9, %v709_v8  ;;  %v1234_v12 = vadd.f32 %v1233_v10, %v1232_v7 }
 0x1f4   : > { %v792_v13 = vmax.f32 %v784_v11, 0.0  ;;  %v714_v14 = vadd.f32 %v1234_v12, %v1131_v5 }
 0x1f6   : > { %v796_v15 = vrot.slane %v792_v13, 7  ;;  %v789_v16 = vadd.f32 %v1378_v3, %v714_v14 }
 0x1f8   : > { %v793_v17 = vmax.f32 %v789_v16, 0.0  ;;  %v802_v18 = vsel %vm327_vm0, 0.0, %v796_v15 }
 0x1f9   : > { %v806_v22 = vrot.slane %v802_v18, 1  ;;  %v813_v23 = vrot.slane %v802_v18, 2 }
 0x1fa   : > { %v797_v19 = vrot.slane %v793_v17, 7 }
 0x1fc   : > { %v803_v20 = vsel %vm327_vm0, %v797_v19, 0.0  ;;  %v798_v21 = vsel %vm327_vm0, %v796_v15, %v797_v19 }
 0x1fd   : > { %v807_v24 = vrot.slane %v798_v21, 1  ;;  %v814_v25 = vrot.slane %v798_v21, 2  ;;  %v816_v26 = vrot.slane %v803_v20, 2  ;;  %v809_v27 = vrot.slane %v803_v20, 1 }
 0x1ff   : > { %v808_v28 = vsel %vm338_vm1, %v806_v22, %v807_v24  ;;  %v815_v29 = vsel %vm346_vm2, %v813_v23, %v814_v25  ;;  %v817_v30 = vsel %vm346_vm2, %v814_v25, %v816_v26  ;;  %v810_v31 = vsel %vm338_vm1, %v807_v24, %v809_v27 }
 0x200   : > { %939 = vmatprep.mubr.f32.mxu0 %v808_v28  ;;  %1411 = vmatprep.mubr.f32.mxu1 %v815_v29 }
 0x201   : > { %1136 = vmatmul.mubr.msk.f32.vlgmr.msra.gmra.mxu0 %vm1685_vm3, %v796_v15  ;;  %1412 = vmatmul.mubr.f32.vlgmr.msra.gmra.mxu1 %v817_v30 }
 0x202   : > { %944 = vmatprep.mubr.f32.mxu0 %v810_v31 }
 0x205   : > { %945 = vmatmul.mubr.f32.gmra.mxu0 %v798_v21 }
 0x2c1   : > { %v1285_v32 = vpop.f32.mrf.mxu0  ;;  %v1413_v33 = vpop.f32.mrf.mxu1 }
 0x2c3   : > { %v1286_v34 = vpop.f32.mrf.mxu0  ;;  %v1016_v61 = vpop.f32.mrf.mxu1 }
 0x2c4   : > { %v1287_v36 = vadd.f32 %v1286_v34, %v1285_v32 }
 0x2c5   : > { %v1288_v37 = vpop.f32.mrf.mxu0 }
 0x2c6   : > { %v942_v38 = vadd.f32 %v1287_v36, %v1134_v35 }
 0x2c7   : > { %v1289_v39 = vpop.f32.mrf.mxu0 }
 0x2c8   : > { %v1017_v40 = vadd.f32 %v1016_v61, %v942_v38  ;;  %v1290_v41 = vadd.f32 %v1289_v39, %v1288_v37 }
 0x2ca   : > { %1025 = vst [vmem:[%s322_s13] sm:$0xff] %v1017_v40  ;;  %v947_v42 = vadd.f32 %v1290_v41, %v1134_v35 }
 0x2cc   : > { %v1022_v43 = vadd.f32 %v1413_v33, %v947_v42 }
 0x2ce   : > { %1026 = vst [vmem:[%s322_s13 + $0x8] sm:$0xff] %v1022_v43 }
 0x2cf PF: > { %s19_s24 = sadd.s32 1, %s1547_s24  }
 0x2d0   : > { %p16_p2 = scmp.ge.s32.totalorder %s19_s24, 4  }
 0x2d2   :  { %18 = sbr.rel (!%p16_p2) target bundleno = 2 (0x2), region = 91 }
 0x2d7   :  { %1048 = vsyncpa [#allocation3], 1 }
 0x2d8   :  { %1050 = vsyncpa [#allocation3 + $0x1], 1 }
 0x2d9   :  { %1051 = vsyncpa [#allocation5], 1 }

</bundles_post_ra>
